<compile_context>
chip_gen: v7x
topology: tpu7x:2x2x1
jax: 0.10.0
libtpu: 0.0.40
codegen_flags: <defaults>
</compile_context>

<pallas_src>
import math
import functools

import jax
import jax.numpy as jnp
from jax import lax
from jax.experimental import pallas as pl
from jax.experimental.pallas import tpu as pltpu


def mha_kernel(x_ref, wqkv_ref, wo_ref, bqkv_ref, bo_ref, o_ref,
               *, num_heads, head_size):
    """One grid step: full MHA forward for a block of `Bb` batch rows.

    x_ref: (Bb, S, H); wqkv_ref: (H, 3H) with 1/sqrt(d) pre-folded into the Q
    columns; wo_ref: (H, H); bqkv_ref: (1, 3H); bo_ref: (1, H); o_ref: (Bb, S, H).
    """
    Bb, S, H = x_ref.shape
    dtype = x_ref.dtype

    # Fused QKV projection: one (Bb*S, H) x (H, 3H) MXU matmul, f32 accumulate,
    # then back to the compute dtype for the attention matmuls.
    x2d = x_ref[...].reshape(Bb * S, H)
    qkv = jnp.dot(x2d, wqkv_ref[...], preferred_element_type=jnp.float32)
    qkv = (qkv + bqkv_ref[...]).astype(dtype)                         # (Bb*S, 3H)

    b_o = bo_ref[...]                                                 # (1, H)

    # Static (unrolled) loops: Bb * num_heads is a tiny compile-time constant.
    for b in range(Bb):
        r0 = b * S
        # Output-projection accumulator for this batch row. W_o is fused into the
        # head loop, so there is no merged-heads scratch / masked column store.
        acc = jnp.zeros((S, H), jnp.float32)
        for h in range(num_heads):
            q_lo = h * head_size
            qh = qkv[r0:r0 + S, q_lo:q_lo + head_size]                # (S, d), pre-scaled
            kh = qkv[r0:r0 + S, H + q_lo:H + q_lo + head_size]        # (S, d)
            vh = qkv[r0:r0 + S, 2 * H + q_lo:2 * H + q_lo + head_size]

            # scores = (Q / sqrt(d)) K^T -- contract on the last dim of both
            # operands, no explicit/XLU transpose of K.
            s = lax.dot_general(qh, kh, (((1,), (1,)), ((), ())),
                                preferred_element_type=jnp.float32)   # (S, S) f32

            # TODO(synk): optional padding `mask` of the PyTorch forward is not
            # wired in (mask=None path only).

            # Stable softmax; normalization deferred past the PV matmul so the
            # (S, 1) reciprocal scales an (S, d) tile instead of (S, S).
            s = s - jnp.max(s, axis=-1, keepdims=True)
            p = jnp.exp(s)
            inv_denom = pl.reciprocal(jnp.sum(p, axis=-1, keepdims=True),
                                      approx=True)                    # (S, 1), EUP
            oh = jnp.dot(p.astype(dtype), vh,
                         preferred_element_type=jnp.float32) * inv_denom   # (S, d)

            # Fused output projection: acc += O_h @ W_o[h*d:(h+1)*d, :].
            acc = acc + jnp.dot(oh.astype(dtype),
                                wo_ref[q_lo:q_lo + head_size, :],
                                preferred_element_type=jnp.float32)

        o_ref[b] = (acc + b_o).astype(o_ref.dtype)


def prepare_mha_params(params, *, head_size):
    """One-time weight fusion (call once, reuse across every forward call).

    Concatenates W_q|W_k|W_v -> (H, 3H) for a single fused QKV matmul and folds
    1/sqrt(head_size) into the Q columns / B_q so the kernel never scales
    activations.
    """
    inv_sqrt_d = 1.0 / math.sqrt(head_size)
    H = params["W_q"].shape[0]
    w_qkv = jnp.concatenate(
        [params["W_q"] * inv_sqrt_d, params["W_k"], params["W_v"]], axis=1)
    b_qkv = jnp.concatenate(
        [params["B_q"] * inv_sqrt_d, params["B_k"], params["B_v"]]).reshape(1, 3 * H)
    return {
        "w_qkv": w_qkv,                      # (H, 3H)
        "b_qkv": b_qkv,                      # (1, 3H)
        "w_o": params["W_o"],                # (H, H)
        "b_o": params["B_o"].reshape(1, H),  # (1, H)
    }


def _default_grid_blocks(batch):
    # v7x-class chips have 2 TensorCores per chip: give each a parallel block.
    # Single-TC chips (v5e / v6e): collapse the batch into one grid step -- a
    # batch grid there is just a serial loop paying ~0.35us/step for ~1KB of work.
    try:
        kind = jax.devices()[0].device_kind.lower()
    except Exception:
        kind = ""
    if "v7" in kind and batch % 2 == 0:
        return 2
    return 1


def multi_headed_attention(x, fused, *, num_heads, head_size, grid_blocks=None):
    """x: (B, S, H); `fused` from prepare_mha_params."""
    B, S, H = x.shape
    assert H == num_heads * head_size
    G = _default_grid_blocks(B) if grid_blocks is None else grid_blocks
    assert B % G == 0
    Bb = B // G

    kernel = functools.partial(mha_kernel, num_heads=num_heads, head_size=head_size)

    return pl.pallas_call(
        kernel,
        out_shape=jax.ShapeDtypeStruct((B, S, H), x.dtype),
        grid_spec=pltpu.PrefetchScalarGridSpec(
            num_scalar_prefetch=0,
            grid=(G,),
            in_specs=[
                pl.BlockSpec((Bb, S, H), lambda g: (g, 0, 0)),     # hidden_states
                pl.BlockSpec((H, 3 * H), lambda g: (0, 0)),        # fused W_qkv
                pl.BlockSpec((H, H), lambda g: (0, 0)),            # W_o
                pl.BlockSpec((1, 3 * H), lambda g: (0, 0)),        # fused b_qkv
                pl.BlockSpec((1, H), lambda g: (0, 0)),            # b_o
            ],
            out_specs=pl.BlockSpec((Bb, S, H), lambda g: (g, 0, 0)),
        ),
        compiler_params=pltpu.CompilerParams(
            dimension_semantics=("parallel",),
            # Actual footprint is well under 1 MiB at these shapes; keep the
            # scoped budget modest so it leaves headroom on every generation
            # (v7x physical VMEM is only 64 MiB).
            vmem_limit_bytes=32 * 1024 * 1024,
        ),
    )(x, fused["w_qkv"], fused["w_o"], fused["b_qkv"], fused["b_o"])


def reference_mha(x, params, *, num_heads, head_size):
    """Pure-JAX replica of the PyTorch forward (mask=None), full-f32 precision."""
    B, S, H = x.shape
    hp = jax.lax.Precision.HIGHEST
    q = jnp.dot(x, params["W_q"], precision=hp) + params["B_q"]
    k = jnp.dot(x, params["W_k"], precision=hp) + params["B_k"]
    v = jnp.dot(x, params["W_v"], precision=hp) + params["B_v"]

    def split(t):
        return t.reshape(B, S, num_heads, head_size).transpose(0, 2, 1, 3)

    q, k, v = split(q), split(k), split(v)
    scores = jnp.einsum("bhqd,bhkd->bhqk", q, k, precision=hp) / math.sqrt(head_size)
    attn = jax.nn.softmax(scores, axis=-1)
    out = jnp.einsum("bhqk,bhkd->bhqd", attn, v, precision=hp)
    out = out.transpose(0, 2, 1, 3).reshape(B, S, H)
    return jnp.dot(out, params["W_o"], precision=hp) + params["B_o"]


if __name__ == "__main__":
    # Module configuration (small, consistent with the forward signature).
    num_heads = 4
    head_size = 8
    seq_len = 8
    batch = 2
    hidden = num_heads * head_size  # 32

    key = jax.random.PRNGKey(0)
    kx, kq, kk, kv, ko, kbq, kbk, kbv, kbo = jax.random.split(key, 9)

    # Well-conditioned deterministic random parameters. (The module's all-ones
    # init makes the softmax fully saturated and amplifies matmul rounding into
    # large output diffs; the forward-pass math being validated is identical.)
    w_scale = 1.0 / math.sqrt(hidden)
    params = {
        "W_q": jax.random.normal(kq, (hidden, hidden), jnp.float32) * w_scale,
        "W_k": jax.random.normal(kk, (hidden, hidden), jnp.float32) * w_scale,
        "W_v": jax.random.normal(kv, (hidden, hidden), jnp.float32) * w_scale,
        "W_o": jax.random.normal(ko, (hidden, hidden), jnp.float32) * w_scale,
        "B_q": jax.random.normal(kbq, (hidden,), jnp.float32) * 0.1,
        "B_k": jax.random.normal(kbk, (hidden,), jnp.float32) * 0.1,
        "B_v": jax.random.normal(kbv, (hidden,), jnp.float32) * 0.1,
        "B_o": jax.random.normal(kbo, (hidden,), jnp.float32) * 0.1,
    }

    x = jax.random.normal(kx, (batch, seq_len, hidden), dtype=jnp.float32)

    fused = prepare_mha_params(params, head_size=head_size)  # one-time fusion

    out = multi_headed_attention(x, fused, num_heads=num_heads, head_size=head_size)
    out = jax.block_until_ready(out)

    ref = reference_mha(x, params, num_heads=num_heads, head_size=head_size)
    assert out.shape == (batch, seq_len, hidden)
    max_err = float(jnp.max(jnp.abs(out - ref)))
    # Tolerance covers TPU default matmul precision and the EUP approx reciprocal
    # on O(1)-magnitude outputs; semantic errors would be O(1).
    assert max_err < 2e-2, f"max abs diff {max_err}"

    print("KERNEL_OK")
</pallas_src>

<mosaic_0001>
module attributes {stable_mosaic.version = 11 : i64} {
  func.func @mha_kernel(%arg0: i32, %arg1: memref<2x8x32xf32, #tpu.memory_space<vmem>>, %arg2: memref<32x96xf32, #tpu.memory_space<vmem>>, %arg3: memref<32x32xf32, #tpu.memory_space<vmem>>, %arg4: memref<1x96xf32, #tpu.memory_space<vmem>>, %arg5: memref<1x32xf32, #tpu.memory_space<vmem>>, %arg6: memref<2x8x32xf32, #tpu.memory_space<vmem>>) attributes {dimension_semantics = [#tpu.dimension_semantics<parallel>], iteration_bounds = array<i64: 1>, scalar_prefetch = 0 : i64, scratch_operands = 0 : i64, tpu.core_type = #tpu.core_type<tc>, window_params = [{transform_indices = @transform_0, window_bounds = array<i64: 2, 8, 32>}, {pipeline_mode = #tpu.pipeline_mode<synchronous>, transform_indices = @transform_1, window_bounds = array<i64: 32, 96>}, {pipeline_mode = #tpu.pipeline_mode<synchronous>, transform_indices = @transform_2, window_bounds = array<i64: 32, 32>}, {pipeline_mode = #tpu.pipeline_mode<synchronous>, transform_indices = @transform_3, window_bounds = array<i64: 1, 96>}, {pipeline_mode = #tpu.pipeline_mode<synchronous>, transform_indices = @transform_4, window_bounds = array<i64: 1, 32>}, {transform_indices = @transform_5, window_bounds = array<i64: 2, 8, 32>}]} {
    %c0 = arith.constant 0 : index
    %c0_0 = arith.constant 0 : index
    %c0_1 = arith.constant 0 : index
    %0 = vector.load %arg1[%c0, %c0_0, %c0_1] : memref<2x8x32xf32, #tpu.memory_space<vmem>>, vector<2x8x32xf32>
    %1 = vector.shape_cast %0 : vector<2x8x32xf32> to vector<16x32xf32>
    %c0_2 = arith.constant 0 : index
    %c0_3 = arith.constant 0 : index
    %2 = vector.load %arg2[%c0_2, %c0_3] : memref<32x96xf32, #tpu.memory_space<vmem>>, vector<32x96xf32>
    %cst = arith.constant dense<0.000000e+00> : vector<16x96xf32>
    %3 = tpu.matmul %1, %2, %cst {dimension_numbers = #tpu.dot_dimension_numbers<[1], [0], [0], [1], [0, 0, 1, 1], [], []>} : vector<16x32xf32>, vector<32x96xf32>, vector<16x96xf32> -> vector<16x96xf32>
    %c0_4 = arith.constant 0 : index
    %c0_5 = arith.constant 0 : index
    %4 = vector.load %arg4[%c0_4, %c0_5] : memref<1x96xf32, #tpu.memory_space<vmem>>, vector<1x96xf32>
    %5 = vector.broadcast %4 : vector<1x96xf32> to vector<16x96xf32>
    %6 = arith.addf %3, %5 : vector<16x96xf32>
    %c0_6 = arith.constant 0 : index
    %c0_7 = arith.constant 0 : index
    %7 = vector.load %arg5[%c0_6, %c0_7] : memref<1x32xf32, #tpu.memory_space<vmem>>, vector<1x32xf32>
    %cst_8 = arith.constant 0.000000e+00 : f32
    %8 = vector.broadcast %cst_8 : f32 to vector<8x32xf32>
    %9 = vector.extract_strided_slice %6 {offsets = [0, 0], sizes = [8, 8], strides = [1, 1]} : vector<16x96xf32> to vector<8x8xf32>
    %10 = vector.extract_strided_slice %6 {offsets = [0, 32], sizes = [8, 8], strides = [1, 1]} : vector<16x96xf32> to vector<8x8xf32>
    %11 = vector.extract_strided_slice %6 {offsets = [0, 64], sizes = [8, 8], strides = [1, 1]} : vector<16x96xf32> to vector<8x8xf32>
    %cst_9 = arith.constant dense<0.000000e+00> : vector<8x8xf32>
    %12 = tpu.matmul %9, %10, %cst_9 {dimension_numbers = #tpu.dot_dimension_numbers<[1], [1], [0], [0], [0, 0, 1, 0], [], []>} : vector<8x8xf32>, vector<8x8xf32>, vector<8x8xf32> -> vector<8x8xf32>
    %cst_10 = arith.constant dense<0xFF800000> : vector<8xf32>
    %13 = vector.multi_reduction <maximumf>, %12, %cst_10 [1] : vector<8x8xf32> to vector<8xf32>
    %14 = vector.shape_cast %13 : vector<8xf32> to vector<8x1xf32>
    %15 = vector.broadcast %14 : vector<8x1xf32> to vector<8x8xf32>
    %16 = arith.subf %12, %15 : vector<8x8xf32>
    %17 = math.exp %16 : vector<8x8xf32>
    %cst_11 = arith.constant dense<0.000000e+00> : vector<8xf32>
    %18 = vector.multi_reduction <add>, %17, %cst_11 [1] : vector<8x8xf32> to vector<8xf32>
    %19 = vector.shape_cast %18 : vector<8xf32> to vector<8x1xf32>
    %20 = tpu.reciprocal %19 {approx = true} : vector<8x1xf32> -> vector<8x1xf32>
    %cst_12 = arith.constant dense<0.000000e+00> : vector<8x8xf32>
    %21 = tpu.matmul %17, %11, %cst_12 {dimension_numbers = #tpu.dot_dimension_numbers<[1], [0], [0], [1], [0, 0, 1, 1], [], []>} : vector<8x8xf32>, vector<8x8xf32>, vector<8x8xf32> -> vector<8x8xf32>
    %22 = vector.broadcast %20 : vector<8x1xf32> to vector<8x8xf32>
    %23 = arith.mulf %21, %22 : vector<8x8xf32>
    %c0_13 = arith.constant 0 : index
    %c0_14 = arith.constant 0 : index
    %24 = vector.load %arg3[%c0_13, %c0_14] : memref<32x32xf32, #tpu.memory_space<vmem>>, vector<8x32xf32>
    %cst_15 = arith.constant dense<0.000000e+00> : vector<8x32xf32>
    %25 = tpu.matmul %23, %24, %cst_15 {dimension_numbers = #tpu.dot_dimension_numbers<[1], [0], [0], [1], [0, 0, 1, 1], [], []>} : vector<8x8xf32>, vector<8x32xf32>, vector<8x32xf32> -> vector<8x32xf32>
    %26 = arith.addf %8, %25 : vector<8x32xf32>
    %27 = vector.extract_strided_slice %6 {offsets = [0, 8], sizes = [8, 8], strides = [1, 1]} : vector<16x96xf32> to vector<8x8xf32>
    %28 = vector.extract_strided_slice %6 {offsets = [0, 40], sizes = [8, 8], strides = [1, 1]} : vector<16x96xf32> to vector<8x8xf32>
    %29 = vector.extract_strided_slice %6 {offsets = [0, 72], sizes = [8, 8], strides = [1, 1]} : vector<16x96xf32> to vector<8x8xf32>
    %cst_16 = arith.constant dense<0.000000e+00> : vector<8x8xf32>
    %30 = tpu.matmul %27, %28, %cst_16 {dimension_numbers = #tpu.dot_dimension_numbers<[1], [1], [0], [0], [0, 0, 1, 0], [], []>} : vector<8x8xf32>, vector<8x8xf32>, vector<8x8xf32> -> vector<8x8xf32>
    %cst_17 = arith.constant dense<0xFF800000> : vector<8xf32>
    %31 = vector.multi_reduction <maximumf>, %30, %cst_17 [1] : vector<8x8xf32> to vector<8xf32>
    %32 = vector.shape_cast %31 : vector<8xf32> to vector<8x1xf32>
    %33 = vector.broadcast %32 : vector<8x1xf32> to vector<8x8xf32>
    %34 = arith.subf %30, %33 : vector<8x8xf32>
    %35 = math.exp %34 : vector<8x8xf32>
    %cst_18 = arith.constant dense<0.000000e+00> : vector<8xf32>
    %36 = vector.multi_reduction <add>, %35, %cst_18 [1] : vector<8x8xf32> to vector<8xf32>
    %37 = vector.shape_cast %36 : vector<8xf32> to vector<8x1xf32>
    %38 = tpu.reciprocal %37 {approx = true} : vector<8x1xf32> -> vector<8x1xf32>
    %cst_19 = arith.constant dense<0.000000e+00> : vector<8x8xf32>
    %39 = tpu.matmul %35, %29, %cst_19 {dimension_numbers = #tpu.dot_dimension_numbers<[1], [0], [0], [1], [0, 0, 1, 1], [], []>} : vector<8x8xf32>, vector<8x8xf32>, vector<8x8xf32> -> vector<8x8xf32>
    %40 = vector.broadcast %38 : vector<8x1xf32> to vector<8x8xf32>
    %41 = arith.mulf %39, %40 : vector<8x8xf32>
    %c8 = arith.constant 8 : index
    %c0_20 = arith.constant 0 : index
    %42 = vector.load %arg3[%c8, %c0_20] : memref<32x32xf32, #tpu.memory_space<vmem>>, vector<8x32xf32>
    %cst_21 = arith.constant dense<0.000000e+00> : vector<8x32xf32>
    %43 = tpu.matmul %41, %42, %cst_21 {dimension_numbers = #tpu.dot_dimension_numbers<[1], [0], [0], [1], [0, 0, 1, 1], [], []>} : vector<8x8xf32>, vector<8x32xf32>, vector<8x32xf32> -> vector<8x32xf32>
    %44 = arith.addf %26, %43 : vector<8x32xf32>
    %45 = vector.extract_strided_slice %6 {offsets = [0, 16], sizes = [8, 8], strides = [1, 1]} : vector<16x96xf32> to vector<8x8xf32>
    %46 = vector.extract_strided_slice %6 {offsets = [0, 48], sizes = [8, 8], strides = [1, 1]} : vector<16x96xf32> to vector<8x8xf32>
    %47 = vector.extract_strided_slice %6 {offsets = [0, 80], sizes = [8, 8], strides = [1, 1]} : vector<16x96xf32> to vector<8x8xf32>
    %cst_22 = arith.constant dense<0.000000e+00> : vector<8x8xf32>
    %48 = tpu.matmul %45, %46, %cst_22 {dimension_numbers = #tpu.dot_dimension_numbers<[1], [1], [0], [0], [0, 0, 1, 0], [], []>} : vector<8x8xf32>, vector<8x8xf32>, vector<8x8xf32> -> vector<8x8xf32>
    %cst_23 = arith.constant dense<0xFF800000> : vector<8xf32>
    %49 = vector.multi_reduction <maximumf>, %48, %cst_23 [1] : vector<8x8xf32> to vector<8xf32>
    %50 = vector.shape_cast %49 : vector<8xf32> to vector<8x1xf32>
    %51 = vector.broadcast %50 : vector<8x1xf32> to vector<8x8xf32>
    %52 = arith.subf %48, %51 : vector<8x8xf32>
    %53 = math.exp %52 : vector<8x8xf32>
    %cst_24 = arith.constant dense<0.000000e+00> : vector<8xf32>
    %54 = vector.multi_reduction <add>, %53, %cst_24 [1] : vector<8x8xf32> to vector<8xf32>
    %55 = vector.shape_cast %54 : vector<8xf32> to vector<8x1xf32>
    %56 = tpu.reciprocal %55 {approx = true} : vector<8x1xf32> -> vector<8x1xf32>
    %cst_25 = arith.constant dense<0.000000e+00> : vector<8x8xf32>
    %57 = tpu.matmul %53, %47, %cst_25 {dimension_numbers = #tpu.dot_dimension_numbers<[1], [0], [0], [1], [0, 0, 1, 1], [], []>} : vector<8x8xf32>, vector<8x8xf32>, vector<8x8xf32> -> vector<8x8xf32>
    %58 = vector.broadcast %56 : vector<8x1xf32> to vector<8x8xf32>
    %59 = arith.mulf %57, %58 : vector<8x8xf32>
    %c16 = arith.constant 16 : index
    %c0_26 = arith.constant 0 : index
    %60 = vector.load %arg3[%c16, %c0_26] : memref<32x32xf32, #tpu.memory_space<vmem>>, vector<8x32xf32>
    %cst_27 = arith.constant dense<0.000000e+00> : vector<8x32xf32>
    %61 = tpu.matmul %59, %60, %cst_27 {dimension_numbers = #tpu.dot_dimension_numbers<[1], [0], [0], [1], [0, 0, 1, 1], [], []>} : vector<8x8xf32>, vector<8x32xf32>, vector<8x32xf32> -> vector<8x32xf32>
    %62 = arith.addf %44, %61 : vector<8x32xf32>
    %63 = vector.extract_strided_slice %6 {offsets = [0, 24], sizes = [8, 8], strides = [1, 1]} : vector<16x96xf32> to vector<8x8xf32>
    %64 = vector.extract_strided_slice %6 {offsets = [0, 56], sizes = [8, 8], strides = [1, 1]} : vector<16x96xf32> to vector<8x8xf32>
    %65 = vector.extract_strided_slice %6 {offsets = [0, 88], sizes = [8, 8], strides = [1, 1]} : vector<16x96xf32> to vector<8x8xf32>
    %cst_28 = arith.constant dense<0.000000e+00> : vector<8x8xf32>
    %66 = tpu.matmul %63, %64, %cst_28 {dimension_numbers = #tpu.dot_dimension_numbers<[1], [1], [0], [0], [0, 0, 1, 0], [], []>} : vector<8x8xf32>, vector<8x8xf32>, vector<8x8xf32> -> vector<8x8xf32>
    %cst_29 = arith.constant dense<0xFF800000> : vector<8xf32>
    %67 = vector.multi_reduction <maximumf>, %66, %cst_29 [1] : vector<8x8xf32> to vector<8xf32>
    %68 = vector.shape_cast %67 : vector<8xf32> to vector<8x1xf32>
    %69 = vector.broadcast %68 : vector<8x1xf32> to vector<8x8xf32>
    %70 = arith.subf %66, %69 : vector<8x8xf32>
    %71 = math.exp %70 : vector<8x8xf32>
    %cst_30 = arith.constant dense<0.000000e+00> : vector<8xf32>
    %72 = vector.multi_reduction <add>, %71, %cst_30 [1] : vector<8x8xf32> to vector<8xf32>
    %73 = vector.shape_cast %72 : vector<8xf32> to vector<8x1xf32>
    %74 = tpu.reciprocal %73 {approx = true} : vector<8x1xf32> -> vector<8x1xf32>
    %cst_31 = arith.constant dense<0.000000e+00> : vector<8x8xf32>
    %75 = tpu.matmul %71, %65, %cst_31 {dimension_numbers = #tpu.dot_dimension_numbers<[1], [0], [0], [1], [0, 0, 1, 1], [], []>} : vector<8x8xf32>, vector<8x8xf32>, vector<8x8xf32> -> vector<8x8xf32>
    %76 = vector.broadcast %74 : vector<8x1xf32> to vector<8x8xf32>
    %77 = arith.mulf %75, %76 : vector<8x8xf32>
    %c24 = arith.constant 24 : index
    %c0_32 = arith.constant 0 : index
    %78 = vector.load %arg3[%c24, %c0_32] : memref<32x32xf32, #tpu.memory_space<vmem>>, vector<8x32xf32>
    %cst_33 = arith.constant dense<0.000000e+00> : vector<8x32xf32>
    %79 = tpu.matmul %77, %78, %cst_33 {dimension_numbers = #tpu.dot_dimension_numbers<[1], [0], [0], [1], [0, 0, 1, 1], [], []>} : vector<8x8xf32>, vector<8x32xf32>, vector<8x32xf32> -> vector<8x32xf32>
    %80 = arith.addf %62, %79 : vector<8x32xf32>
    %81 = vector.broadcast %7 : vector<1x32xf32> to vector<8x32xf32>
    %82 = arith.addf %80, %81 : vector<8x32xf32>
    %c0_34 = arith.constant 0 : index
    %c0_35 = arith.constant 0 : index
    %c0_36 = arith.constant 0 : index
    %83 = vector.load %arg6[%c0_34, %c0_35, %c0_36] : memref<2x8x32xf32, #tpu.memory_space<vmem>>, vector<1x8x32xf32>
    %84 = vector.shape_cast %83 : vector<1x8x32xf32> to vector<8x32xf32>
    %85 = vector.shape_cast %82 : vector<8x32xf32> to vector<1x8x32xf32>
    tpu.vector_store %arg6[%c0_34, %c0_35, %c0_36], %85 {strides = array<i32>} : memref<2x8x32xf32, #tpu.memory_space<vmem>>, vector<1x8x32xf32>,
    %cst_37 = arith.constant 0.000000e+00 : f32
    %86 = vector.broadcast %cst_37 : f32 to vector<8x32xf32>
    %87 = vector.extract_strided_slice %6 {offsets = [8, 0], sizes = [8, 8], strides = [1, 1]} : vector<16x96xf32> to vector<8x8xf32>
    %88 = vector.extract_strided_slice %6 {offsets = [8, 32], sizes = [8, 8], strides = [1, 1]} : vector<16x96xf32> to vector<8x8xf32>
    %89 = vector.extract_strided_slice %6 {offsets = [8, 64], sizes = [8, 8], strides = [1, 1]} : vector<16x96xf32> to vector<8x8xf32>
    %cst_38 = arith.constant dense<0.000000e+00> : vector<8x8xf32>
    %90 = tpu.matmul %87, %88, %cst_38 {dimension_numbers = #tpu.dot_dimension_numbers<[1], [1], [0], [0], [0, 0, 1, 0], [], []>} : vector<8x8xf32>, vector<8x8xf32>, vector<8x8xf32> -> vector<8x8xf32>
    %cst_39 = arith.constant dense<0xFF800000> : vector<8xf32>
    %91 = vector.multi_reduction <maximumf>, %90, %cst_39 [1] : vector<8x8xf32> to vector<8xf32>
    %92 = vector.shape_cast %91 : vector<8xf32> to vector<8x1xf32>
    %93 = vector.broadcast %92 : vector<8x1xf32> to vector<8x8xf32>
    %94 = arith.subf %90, %93 : vector<8x8xf32>
    %95 = math.exp %94 : vector<8x8xf32>
    %cst_40 = arith.constant dense<0.000000e+00> : vector<8xf32>
    %96 = vector.multi_reduction <add>, %95, %cst_40 [1] : vector<8x8xf32> to vector<8xf32>
    %97 = vector.shape_cast %96 : vector<8xf32> to vector<8x1xf32>
    %98 = tpu.reciprocal %97 {approx = true} : vector<8x1xf32> -> vector<8x1xf32>
    %cst_41 = arith.constant dense<0.000000e+00> : vector<8x8xf32>
    %99 = tpu.matmul %95, %89, %cst_41 {dimension_numbers = #tpu.dot_dimension_numbers<[1], [0], [0], [1], [0, 0, 1, 1], [], []>} : vector<8x8xf32>, vector<8x8xf32>, vector<8x8xf32> -> vector<8x8xf32>
    %100 = vector.broadcast %98 : vector<8x1xf32> to vector<8x8xf32>
    %101 = arith.mulf %99, %100 : vector<8x8xf32>
    %c0_42 = arith.constant 0 : index
    %c0_43 = arith.constant 0 : index
    %102 = vector.load %arg3[%c0_42, %c0_43] : memref<32x32xf32, #tpu.memory_space<vmem>>, vector<8x32xf32>
    %cst_44 = arith.constant dense<0.000000e+00> : vector<8x32xf32>
    %103 = tpu.matmul %101, %102, %cst_44 {dimension_numbers = #tpu.dot_dimension_numbers<[1], [0], [0], [1], [0, 0, 1, 1], [], []>} : vector<8x8xf32>, vector<8x32xf32>, vector<8x32xf32> -> vector<8x32xf32>
    %104 = arith.addf %86, %103 : vector<8x32xf32>
    %105 = vector.extract_strided_slice %6 {offsets = [8, 8], sizes = [8, 8], strides = [1, 1]} : vector<16x96xf32> to vector<8x8xf32>
    %106 = vector.extract_strided_slice %6 {offsets = [8, 40], sizes = [8, 8], strides = [1, 1]} : vector<16x96xf32> to vector<8x8xf32>
    %107 = vector.extract_strided_slice %6 {offsets = [8, 72], sizes = [8, 8], strides = [1, 1]} : vector<16x96xf32> to vector<8x8xf32>
    %cst_45 = arith.constant dense<0.000000e+00> : vector<8x8xf32>
    %108 = tpu.matmul %105, %106, %cst_45 {dimension_numbers = #tpu.dot_dimension_numbers<[1], [1], [0], [0], [0, 0, 1, 0], [], []>} : vector<8x8xf32>, vector<8x8xf32>, vector<8x8xf32> -> vector<8x8xf32>
    %cst_46 = arith.constant dense<0xFF800000> : vector<8xf32>
    %109 = vector.multi_reduction <maximumf>, %108, %cst_46 [1] : vector<8x8xf32> to vector<8xf32>
    %110 = vector.shape_cast %109 : vector<8xf32> to vector<8x1xf32>
    %111 = vector.broadcast %110 : vector<8x1xf32> to vector<8x8xf32>
    %112 = arith.subf %108, %111 : vector<8x8xf32>
    %113 = math.exp %112 : vector<8x8xf32>
    %cst_47 = arith.constant dense<0.000000e+00> : vector<8xf32>
    %114 = vector.multi_reduction <add>, %113, %cst_47 [1] : vector<8x8xf32> to vector<8xf32>
    %115 = vector.shape_cast %114 : vector<8xf32> to vector<8x1xf32>
    %116 = tpu.reciprocal %115 {approx = true} : vector<8x1xf32> -> vector<8x1xf32>
    %cst_48 = arith.constant dense<0.000000e+00> : vector<8x8xf32>
    %117 = tpu.matmul %113, %107, %cst_48 {dimension_numbers = #tpu.dot_dimension_numbers<[1], [0], [0], [1], [0, 0, 1, 1], [], []>} : vector<8x8xf32>, vector<8x8xf32>, vector<8x8xf32> -> vector<8x8xf32>
    %118 = vector.broadcast %116 : vector<8x1xf32> to vector<8x8xf32>
    %119 = arith.mulf %117, %118 : vector<8x8xf32>
    %c8_49 = arith.constant 8 : index
    %c0_50 = arith.constant 0 : index
    %120 = vector.load %arg3[%c8_49, %c0_50] : memref<32x32xf32, #tpu.memory_space<vmem>>, vector<8x32xf32>
    %cst_51 = arith.constant dense<0.000000e+00> : vector<8x32xf32>
    %121 = tpu.matmul %119, %120, %cst_51 {dimension_numbers = #tpu.dot_dimension_numbers<[1], [0], [0], [1], [0, 0, 1, 1], [], []>} : vector<8x8xf32>, vector<8x32xf32>, vector<8x32xf32> -> vector<8x32xf32>
    %122 = arith.addf %104, %121 : vector<8x32xf32>
    %123 = vector.extract_strided_slice %6 {offsets = [8, 16], sizes = [8, 8], strides = [1, 1]} : vector<16x96xf32> to vector<8x8xf32>
    %124 = vector.extract_strided_slice %6 {offsets = [8, 48], sizes = [8, 8], strides = [1, 1]} : vector<16x96xf32> to vector<8x8xf32>
    %125 = vector.extract_strided_slice %6 {offsets = [8, 80], sizes = [8, 8], strides = [1, 1]} : vector<16x96xf32> to vector<8x8xf32>
    %cst_52 = arith.constant dense<0.000000e+00> : vector<8x8xf32>
    %126 = tpu.matmul %123, %124, %cst_52 {dimension_numbers = #tpu.dot_dimension_numbers<[1], [1], [0], [0], [0, 0, 1, 0], [], []>} : vector<8x8xf32>, vector<8x8xf32>, vector<8x8xf32> -> vector<8x8xf32>
    %cst_53 = arith.constant dense<0xFF800000> : vector<8xf32>
    %127 = vector.multi_reduction <maximumf>, %126, %cst_53 [1] : vector<8x8xf32> to vector<8xf32>
    %128 = vector.shape_cast %127 : vector<8xf32> to vector<8x1xf32>
    %129 = vector.broadcast %128 : vector<8x1xf32> to vector<8x8xf32>
    %130 = arith.subf %126, %129 : vector<8x8xf32>
    %131 = math.exp %130 : vector<8x8xf32>
    %cst_54 = arith.constant dense<0.000000e+00> : vector<8xf32>
    %132 = vector.multi_reduction <add>, %131, %cst_54 [1] : vector<8x8xf32> to vector<8xf32>
    %133 = vector.shape_cast %132 : vector<8xf32> to vector<8x1xf32>
    %134 = tpu.reciprocal %133 {approx = true} : vector<8x1xf32> -> vector<8x1xf32>
    %cst_55 = arith.constant dense<0.000000e+00> : vector<8x8xf32>
    %135 = tpu.matmul %131, %125, %cst_55 {dimension_numbers = #tpu.dot_dimension_numbers<[1], [0], [0], [1], [0, 0, 1, 1], [], []>} : vector<8x8xf32>, vector<8x8xf32>, vector<8x8xf32> -> vector<8x8xf32>
    %136 = vector.broadcast %134 : vector<8x1xf32> to vector<8x8xf32>
    %137 = arith.mulf %135, %136 : vector<8x8xf32>
    %c16_56 = arith.constant 16 : index
    %c0_57 = arith.constant 0 : index
    %138 = vector.load %arg3[%c16_56, %c0_57] : memref<32x32xf32, #tpu.memory_space<vmem>>, vector<8x32xf32>
    %cst_58 = arith.constant dense<0.000000e+00> : vector<8x32xf32>
    %139 = tpu.matmul %137, %138, %cst_58 {dimension_numbers = #tpu.dot_dimension_numbers<[1], [0], [0], [1], [0, 0, 1, 1], [], []>} : vector<8x8xf32>, vector<8x32xf32>, vector<8x32xf32> -> vector<8x32xf32>
    %140 = arith.addf %122, %139 : vector<8x32xf32>
    %141 = vector.extract_strided_slice %6 {offsets = [8, 24], sizes = [8, 8], strides = [1, 1]} : vector<16x96xf32> to vector<8x8xf32>
    %142 = vector.extract_strided_slice %6 {offsets = [8, 56], sizes = [8, 8], strides = [1, 1]} : vector<16x96xf32> to vector<8x8xf32>
    %143 = vector.extract_strided_slice %6 {offsets = [8, 88], sizes = [8, 8], strides = [1, 1]} : vector<16x96xf32> to vector<8x8xf32>
    %cst_59 = arith.constant dense<0.000000e+00> : vector<8x8xf32>
    %144 = tpu.matmul %141, %142, %cst_59 {dimension_numbers = #tpu.dot_dimension_numbers<[1], [1], [0], [0], [0, 0, 1, 0], [], []>} : vector<8x8xf32>, vector<8x8xf32>, vector<8x8xf32> -> vector<8x8xf32>
    %cst_60 = arith.constant dense<0xFF800000> : vector<8xf32>
    %145 = vector.multi_reduction <maximumf>, %144, %cst_60 [1] : vector<8x8xf32> to vector<8xf32>
    %146 = vector.shape_cast %145 : vector<8xf32> to vector<8x1xf32>
    %147 = vector.broadcast %146 : vector<8x1xf32> to vector<8x8xf32>
    %148 = arith.subf %144, %147 : vector<8x8xf32>
    %149 = math.exp %148 : vector<8x8xf32>
    %cst_61 = arith.constant dense<0.000000e+00> : vector<8xf32>
    %150 = vector.multi_reduction <add>, %149, %cst_61 [1] : vector<8x8xf32> to vector<8xf32>
    %151 = vector.shape_cast %150 : vector<8xf32> to vector<8x1xf32>
    %152 = tpu.reciprocal %151 {approx = true} : vector<8x1xf32> -> vector<8x1xf32>
    %cst_62 = arith.constant dense<0.000000e+00> : vector<8x8xf32>
    %153 = tpu.matmul %149, %143, %cst_62 {dimension_numbers = #tpu.dot_dimension_numbers<[1], [0], [0], [1], [0, 0, 1, 1], [], []>} : vector<8x8xf32>, vector<8x8xf32>, vector<8x8xf32> -> vector<8x8xf32>
    %154 = vector.broadcast %152 : vector<8x1xf32> to vector<8x8xf32>
    %155 = arith.mulf %153, %154 : vector<8x8xf32>
    %c24_63 = arith.constant 24 : index
    %c0_64 = arith.constant 0 : index
    %156 = vector.load %arg3[%c24_63, %c0_64] : memref<32x32xf32, #tpu.memory_space<vmem>>, vector<8x32xf32>
    %cst_65 = arith.constant dense<0.000000e+00> : vector<8x32xf32>
    %157 = tpu.matmul %155, %156, %cst_65 {dimension_numbers = #tpu.dot_dimension_numbers<[1], [0], [0], [1], [0, 0, 1, 1], [], []>} : vector<8x8xf32>, vector<8x32xf32>, vector<8x32xf32> -> vector<8x32xf32>
    %158 = arith.addf %140, %157 : vector<8x32xf32>
    %159 = vector.broadcast %7 : vector<1x32xf32> to vector<8x32xf32>
    %160 = arith.addf %158, %159 : vector<8x32xf32>
    %c1 = arith.constant 1 : index
    %c0_66 = arith.constant 0 : index
    %c0_67 = arith.constant 0 : index
    %161 = vector.load %arg6[%c1, %c0_66, %c0_67] : memref<2x8x32xf32, #tpu.memory_space<vmem>>, vector<1x8x32xf32>
    %162 = vector.shape_cast %161 : vector<1x8x32xf32> to vector<8x32xf32>
    %163 = vector.shape_cast %160 : vector<8x32xf32> to vector<1x8x32xf32>
    tpu.vector_store %arg6[%c1, %c0_66, %c0_67], %163 {strides = array<i32>} : memref<2x8x32xf32, #tpu.memory_space<vmem>>, vector<1x8x32xf32>,
    return
  }
  func.func @transform_0(%arg0: i32) -> (i32, i32, i32) {
    %c0_i32 = arith.constant 0 : i32
    %c0_i32_0 = arith.constant 0 : i32
    %c0_i32_1 = arith.constant 0 : i32
    return %arg0, %c0_i32, %c0_i32_0 : i32, i32, i32
  }
  func.func @transform_1(%arg0: i32) -> (i32, i32) {
    %c0_i32 = arith.constant 0 : i32
    %c0_i32_0 = arith.constant 0 : i32
    %c0_i32_1 = arith.constant 0 : i32
    return %c0_i32, %c0_i32_0 : i32, i32
  }
  func.func @transform_2(%arg0: i32) -> (i32, i32) {
    %c0_i32 = arith.constant 0 : i32
    %c0_i32_0 = arith.constant 0 : i32
    %c0_i32_1 = arith.constant 0 : i32
    return %c0_i32, %c0_i32_0 : i32, i32
  }
  func.func @transform_3(%arg0: i32) -> (i32, i32) {
    %c0_i32 = arith.constant 0 : i32
    %c0_i32_0 = arith.constant 0 : i32
    %c0_i32_1 = arith.constant 0 : i32
    return %c0_i32, %c0_i32_0 : i32, i32
  }
  func.func @transform_4(%arg0: i32) -> (i32, i32) {
    %c0_i32 = arith.constant 0 : i32
    %c0_i32_0 = arith.constant 0 : i32
    %c0_i32_1 = arith.constant 0 : i32
    return %c0_i32, %c0_i32_0 : i32, i32
  }
  func.func @transform_5(%arg0: i32) -> (i32, i32, i32) {
    %c0_i32 = arith.constant 0 : i32
    %c0_i32_0 = arith.constant 0 : i32
    %c0_i32_1 = arith.constant 0 : i32
    return %arg0, %c0_i32, %c0_i32_0 : i32, i32, i32
  }
}

</mosaic_0001>

<bundles_post_ra>
// kernel: tpu_custom_call.1
= control target key start
LH: loop header
LB: loop body
LE: loop exit
PB: predicated region body
PF: predicated region fallthrough
CT: control target
= control target key end

     0   :  { %10 = vsyncpa [#allocation3], 0  ;;  %s2795_s0 = inlined_call_operand.hbm [shape: f32[2,8,32], index: 0, kind: input, shape index: {}]   ;;  %s2796_s1 = inlined_call_operand.hbm [shape: f32[32,96], index: 1, kind: input, shape index: {}]   ;;  %s2797_s2 = inlined_call_operand.hbm [shape: f32[32,32], index: 2, kind: input, shape index: {}]   ;;  %s2798_s3 = inlined_call_operand.vmem [shape: f32[1,96], index: 3, kind: input, shape index: {}]   ;;  %s2799_s4 = inlined_call_operand.vmem [shape: f32[1,32], index: 4, kind: input, shape index: {}]   ;;  %s2800_s5 = inlined_call_operand.hbm [shape: f32[2,8,32], index: 5, kind: output, shape index: {}]  }
   0x1   :  { %11 = vsyncpa [#allocation6], 0 }
   0x2   :  { %12 = vsyncpa [#allocation4], 0  ;;  %s2476_s18 = smov [#allocation5]   ;;  %s2477_s20 = smov [#allocation2]  }
   0x3   :  { %s30_s19 = sshll.u32 %s2476_s18, 4  ;;  %s18_s21 = sshll.u32 %s2477_s20, 4  ;;  %s31_s19 = int_to_ptr.vmem [resolvable:$true] %s30_s19  ;;  %s2525_s21 = int_to_ptr.vmem [resolvable:$true] %s18_s21 }
   0x4   :  { %s2382_s24 = scalar_lea.hbm %s2796_s1, 512 }
   0x5   :  { %p2383_p0 = scmp.ne.s32.totalorder %s2796_s1, %s2382_s24  ;;  %p2386_p1 = scmp.lt.u32.totalorder %s2382_s24, %s2796_s1 }
   0x7   :  { %p2388_p2 = pnand %p2386_p1, %p2383_p0 }
   0x9   :  { %2391 = shalt.err (!%p2388_p2)
}
   0xa   :  { %s2392_s29 = scalar_lea.vmem %s31_s19, 512  ;;  %p2397_p4 = scmp.lt.s32.totalorder %s31_s19, %s31_s19 }
   0xb   :  { %p2393_p3 = scmp.ne.s32.totalorder %s31_s19, %s2392_s29  ;;  %p2398_p5 = scmp.lt.s32.totalorder %s2392_s29, %s2392_s29 }
   0xd   :  { %p2399_p6 = por %p2398_p5, %p2397_p4 }
   0xf   :  { %p2400_p7 = pnand %p2399_p6, %p2393_p3 }
  0x11   :  { %2403 = shalt.err (!%p2400_p7)
}
  0x12   :  { %s2478_s30 = smov 128   ;;  %s2479_s6 = smov 8  }
  0x13   :  { %36 = dma.hbm_to_vmem [thread:$0]  %s2796_s1, 512, %s31_s19, [#allocation6], %s2478_s30, %s2478_s30, %s2479_s6  }
  0x14   :  { %s2404_s11 = scalar_lea.hbm %s2795_s0, 256 }
  0x15   :  { %p2405_p8 = scmp.ne.s32.totalorder %s2795_s0, %s2404_s11  ;;  %p2408_p9 = scmp.lt.u32.totalorder %s2404_s11, %s2795_s0 }
  0x17   :  { %p2410_p10 = pnand %p2408_p9, %p2405_p8 }
  0x19   :  { %2413 = shalt.err (!%p2410_p10)
}
  0x1a   :  { %s2414_s16 = scalar_lea.vmem %s2525_s21, 256  ;;  %p2419_p12 = scmp.lt.s32.totalorder %s2525_s21, %s2525_s21 }
  0x1b   :  { %p2415_p11 = scmp.ne.s32.totalorder %s2525_s21, %s2414_s16  ;;  %p2420_p13 = scmp.lt.s32.totalorder %s2414_s16, %s2414_s16 }
  0x1d   :  { %p2421_p0 = por %p2420_p13, %p2419_p12 }
  0x1f   :  { %p2422_p1 = pnand %p2421_p0, %p2415_p11 }
  0x21   :  { %2425 = shalt.err (!%p2422_p1)
}
  0x22   :  { %24 = dma.hbm_to_vmem [thread:$0]  %s2795_s0, 256, %s2525_s21, [#allocation3], %s2478_s30, %s2478_s30, %s2479_s6  }
  0x23   :  { %s2480_s18 = smov [#allocation7]   ;;  %s2426_s23 = scalar_lea.hbm %s2797_s2, 512 }
  0x24   :  { %s42_s19 = sshll.u32 %s2480_s18, 4  ;;  %p2427_p2 = scmp.ne.s32.totalorder %s2797_s2, %s2426_s23  ;;  %s43_s19 = int_to_ptr.vmem [resolvable:$true] %s42_s19 }
  0x25   :  { %p2430_p3 = scmp.lt.u32.totalorder %s2426_s23, %s2797_s2 }
  0x27   :  { %p2432_p4 = pnand %p2430_p3, %p2427_p2 }
  0x29   :  { %2435 = shalt.err (!%p2432_p4)
}
  0x2a   :  { %s2436_s28 = scalar_lea.vmem %s43_s19, 512  ;;  %p2441_p6 = scmp.lt.s32.totalorder %s43_s19, %s43_s19 }
  0x2b   :  { %p2437_p5 = scmp.ne.s32.totalorder %s43_s19, %s2436_s28  ;;  %p2442_p7 = scmp.lt.s32.totalorder %s2436_s28, %s2436_s28 }
  0x2d   :  { %p2443_p8 = por %p2442_p7, %p2441_p6 }
  0x2f   :  { %p2444_p9 = pnand %p2443_p8, %p2437_p5 }
  0x31   :  { %2447 = shalt.err (!%p2444_p9)
}
  0x32   :  { %48 = dma.hbm_to_vmem [thread:$0]  %s2797_s2, 512, %s43_s19, [#allocation6], %s2478_s30, %s2478_s30, %s2479_s6  }
  0x33   :  { %2470 = dma.done.wait [#allocation3], 256  }
  0x34   :  { %2471 = vsyncadd [#allocation3], 4294967040 }
  0x35   :  { %2472 = dma.done.wait [#allocation6], 1024  }
  0x36   :  { %2473 = vsyncadd [#allocation6], 4294966272  ;;  %vm75_vm0 = vcmask 261120   ;;  %v64_v0 = vld [vmem:[#allocation5] sm:$0xff]  ;;  %v65_v1 = vld [vmem:[#allocation5 + $0x8] sm:$0xff]  ;;  %v2481_v8 = vmov 0.0  }
  0x37   :  { %v66_v2 = vld [vmem:[#allocation5 + $0x10] sm:$0xff]  ;;  %v2323_v3 = vpack.c.bf16 %v65_v1, %v64_v0  ;;  %v67_v4 = vld [vmem:[#allocation5 + $0x18] sm:$0xff]  ;;  %2203 = vmatprep.subr.mxu1 %v2481_v8  ;;  %vm2482_vm1 = vmmov 0   ;;  %s2483_s7 = smov 120   ;;  %s2484_s8 = smov 96   ;;  %vm161_vm2 = vcmask 64512  }
  0x38   :  { %v62_v5 = vld [vmem:[#allocation2] sm:$0xff]  ;;  %v2327_v6 = vpack.c.bf16 %v67_v4, %v66_v2  ;;  %v63_v7 = vld [vmem:[#allocation2 + $0x8] sm:$0xff]  ;;  %2205 = vmatprep.mubr.msk.f32.mxu1 %vm2482_vm1, %v2481_v8  ;;  %s2485_s9 = smov 88   ;;  %s2487_s10 = smov 64   ;;  %v2633_v35 = vld [vmem:[#allocation7 + $0x8] sm:$0xff] }
  0x39   :  { %2200 = vmatprep.mubr.msk.f32.mxu0 %vm75_vm0, %v62_v5  ;;  %2324 = vmatprep.subr.bf16.mxu0 %v2323_v3  ;;  %v2102_v9 = vld [vmem:[%s2798_s3] ss:$0 sm:$0xff]  ;;  %s2486_s3 = smov 56   ;;  %s2488_s11 = smov 80   ;;  %v2636_v36 = vld [vmem:[#allocation7] sm:$0xff] }
  0x3a   :  { %2326 = vmatpush3.bf16.msra.mxu0 %v2323_v3  ;;  %s2489_s12 = smov 112   ;;  %s2490_s13 = smov 48   ;;  %v2671_v1 = vld [vmem:[#allocation7 + $0x10] sm:$0xff] }
  0x3b   :  { %2328 = vmatprep.subr.bf16.mxu0 %v2327_v6  ;;  %s2491_s14 = smov 72   ;;  %s2492_s15 = smov 104  }
  0x3c   :  { %s2493_s16 = smov 40  }
  0x3e   :  { %2330 = vmatpush3.bf16.msra.mxu0 %v2327_v6 }
  0x3f   :  { %2213 = vmatprep.subr.mxu0 %v2481_v8 }
  0x41   :  { %2201 = vmatmul.mubr.msk.f32.vlgmr.msra.gmra.mrb[0].mxu0 %vm75_vm0, %v63_v7 }
  0x42   :  { %2215 = vmatprep.mubr.msk.f32.mxu0 %vm2482_vm1, %v2481_v8 }
 0x114   :  { %v2202_v10 = vpop.f32.mrb[0].mxu0 }
 0x115   :  { %v2588_v11 = vadd.f32 %v2202_v10, %v2102_v9  ;;  %v148_v12 = vpop.f32.mrb[1].mxu0 }
 0x116   :  { %v2590_v13 = vadd.f32 %v2102_v9, %v148_v12 }
 0x118   :  { %324 = vrot.lane.b32.xlu1 %v2590_v13, %s2483_s7  ;;  %159 = vrot.lane.b32.xlu0 %v2590_v13, %s2484_s8 }
 0x11c   :  { %326 = vrot.lane.b32.xlu0 %v2590_v13, %s2485_s9 }
 0x18a   :  { %v160_v14 = vpop.permute.xlu0 %159  ;;  %v325_v16 = vpop.permute.xlu1 %324 }
 0x18b   :  { %2204 = vmatpush3.xpose.msk.msra.mxu1 %vm161_vm2, %v160_v14 }
 0x18c   :  { %2208 = vmatprep.subr.mxu1 %v2481_v8 }
 0x18e   :  { %2206 = vmatmul.mubr.msk.f32.vlgmr.msra.gmra.mrb[0].mxu1 %vm161_vm2, %v2590_v13  ;;  %v327_v15 = vpop.permute.xlu0 %326 }
 0x18f   :  { %2214 = vmatpush3.xpose.msk.msra.mxu0 %vm161_vm2, %v327_v15  ;;  %2210 = vmatprep.mubr.msk.f32.mxu1 %vm2482_vm1, %v2481_v8 }
 0x190   :  { %2223 = vmatprep.subr.mxu0 %v2481_v8 }
 0x192   :  { %2216 = vmatmul.mubr.msk.f32.vlgmr.msra.gmra.mrb[2].mxu0 %vm161_vm2, %v325_v16 }
 0x193   :  { %2225 = vmatprep.mubr.msk.f32.mxu0 %vm2482_vm1, %v2481_v8  ;;  %2224 = vmatpush3.msra.mxu0 %v2633_v35 }
 0x194   :  { %2233 = vmatprep.subr.mxu0 %v2481_v8 }
 0x261   :  { %v232_v17 = vpop.f32.mrb[0].mxu1 }
 0x262   :  { %v2207_v18 = vpop.f32.mrb[1].mxu1  ;;  %v236_v19 = vsel %vm161_vm2, %v232_v17, -inf }
 0x263   :  { %237 = vmax.xlane.f32.xlu1 %v236_v19 }
 0x265   :  { %v398_v20 = vpop.f32.mrb[2].mxu0 }
 0x266   :  { %v2217_v21 = vpop.f32.mrb[3].mxu0  ;;  %v402_v22 = vsel %vm161_vm2, %v398_v20, -inf }
 0x267   :  { %403 = vmax.xlane.f32.xlu0 %v402_v22 }
 0x274   :  { %412 = vrot.lane.b32.xlu1 %v2590_v13, %s2486_s3 }
 0x27d   :  { %246 = vrot.lane.b32.xlu0 %v2590_v13, %s2487_s10 }
 0x281   :  { %638 = vrot.lane.b32.xlu0 %v2590_v13, %s2488_s11 }
 0x285   :  { %636 = vrot.lane.b32.xlu0 %v2590_v13, %s2489_s12 }
 0x2f0   :  { %v238_v23 = vpop.xlane.xlu1 %237 }
 0x2f1   :  { %v239_v24 = vsub.f32 %v232_v17, %v238_v23 }
 0x2f3   :  { %v240_v25 = vmul.f32 1.442695, %v239_v24  ;;  %v2704_v24 = vld [vmem:[#allocation7 + $0x18] sm:$0xff] }
 0x2f4   :  { %v404_v26 = vpop.xlane.xlu0 %403  ;;  %v413_v31 = vpop.permute.xlu1 %412 }
 0x2f5   :  { %2350 = vpow2.f32 %v240_v25  ;;  %v405_v27 = vsub.f32 %v398_v20, %v404_v26 }
 0x2f7   :  { %v406_v28 = vmul.f32 1.442695, %v405_v27 }
 0x2f8   :  { %v247_v29 = vpop.permute.xlu0 %246 }
 0x2f9   :  { %2352 = vpow2.f32 %v406_v28  ;;  %2209 = vmatpush3.msra.mxu1 %v247_v29 }
 0x2fa   :  { %2218 = vmatprep.subr.mxu1 %v2481_v8 }
 0x2fc   :  { %v639_v37 = vpop.permute.xlu0 %638 }
 0x2ff   :  { %v2351_v30 = vpop.eup %2350 }
 0x300   :  { %2211 = vmatmul.mubr.msk.f32.vlgmr.msra.gmra.mrb[2].mxu1 %vm161_vm2, %v2351_v30  ;;  %v242_v32 = vsel %vm161_vm2, %v2351_v30, 0.0  ;;  %v637_v38 = vpop.permute.xlu0 %636 }
 0x301   :  { %2219 = vmatpush3.msra.mxu1 %v413_v31  ;;  %243 = vadd.xlane.f32.xlu0 %v242_v32 }
 0x302   :  { %2220 = vmatprep.mubr.msk.f32.mxu1 %vm2482_vm1, %v2481_v8  ;;  %2228 = vmatprep.subr.mxu1 %v2481_v8 }
 0x303   :  { %v2353_v33 = vpop.eup %2352 }
 0x304   :  { %2221 = vmatmul.mubr.msk.f32.vlgmr.msra.gmra.mrb[4].mxu1 %vm161_vm2, %v2353_v33  ;;  %v408_v34 = vsel %vm161_vm2, %v2353_v33, 0.0 }
 0x305   :  { %409 = vadd.xlane.f32.xlu1 %v408_v34  ;;  %2230 = vmatprep.mubr.msk.f32.mxu1 %vm2482_vm1, %v2481_v8 }
 0x306   :  { %2229 = vmatpush3.msra.mxu1 %v2636_v36 }
 0x307   :  { %2238 = vmatprep.subr.mxu1 %v2481_v8 }
 0x316   :  { %724 = vrot.lane.b32.xlu1 %v2590_v13, %s2490_s13 }
 0x317   :  { %878 = vrot.lane.b32.xlu0 %v2590_v13, %s2491_s14 }
 0x38e   :  { %v244_v39 = vpop.xlane.xlu0 %243 }
 0x38f   :  { %2354 = vrcp.f32 %v244_v39 }
 0x392   :  { %v410_v40 = vpop.xlane.xlu1 %409  ;;  %v879_v62 = vpop.permute.xlu0 %878 }
 0x393   :  { %2356 = vrcp.f32 %v410_v40 }
 0x396   :  { %v725_v45 = vpop.permute.xlu1 %724 }
 0x399   :  { %v2355_v41 = vpop.eup %2354 }
 0x39d   :  { %v2357_v46 = vpop.eup %2356 }
 0x3d3   :  { %v318_v42 = vpop.f32.mrb[2].mxu1 }
 0x3d4   :  { %v322_v43 = vmul.f32 %v2355_v41, %v318_v42  ;;  %v2212_v44 = vpop.f32.mrb[3].mxu1 }
 0x3d6   :  { %2231 = vmatmul.mubr.msk.f32.vlgmr.msra.gmra.mrb[6].mxu1 %vm161_vm2, %v322_v43 }
 0x3d7   :  { %2239 = vmatpush3.msra.mxu1 %v725_v45  ;;  %v484_v47 = vpop.f32.mrb[4].mxu1  ;;  %2240 = vmatprep.mubr.msk.f32.mxu1 %vm2482_vm1, %v2481_v8 }
 0x3d8   :  { %v488_v48 = vmul.f32 %v2357_v46, %v484_v47  ;;  %v2222_v49 = vpop.f32.mrb[5].mxu1  ;;  %2248 = vmatprep.subr.mxu1 %v2481_v8 }
 0x3d9   :  { %v2738_v49 = vld [vmem:[%s2799_s4] ss:$0 sm:$0xff]  ;;  %s2494_s4 = smov [#allocation8]  }
 0x3da   :  { %2226 = vmatmul.mubr.msk.f32.vlgmr.msra.gmra.mrb[4].mxu0 %vm161_vm2, %v488_v48  ;;  %s2089_s18 = sshll.u32 %s2494_s4, 4  ;;  %s2090_s18 = int_to_ptr.vmem [resolvable:$true] %s2089_s18 }
 0x3db   :  { %2234 = vmatpush3.xpose.msk.msra.mxu0 %vm161_vm2, %v639_v37  ;;  %2235 = vmatprep.mubr.msk.f32.mxu0 %vm2482_vm1, %v2481_v8  ;;  %s2448_s19 = scalar_lea.vmem %s2090_s18, 256  ;;  %p2453_p11 = scmp.lt.s32.totalorder %s2090_s18, %s2090_s18 }
 0x3dc   :  { %2243 = vmatprep.subr.mxu0 %v2481_v8  ;;  %p2449_p10 = scmp.ne.s32.totalorder %s2090_s18, %s2448_s19  ;;  %p2454_p12 = scmp.lt.s32.totalorder %s2448_s19, %s2448_s19 }
 0x3de   :  { %2236 = vmatmul.mubr.msk.f32.vlgmr.msra.gmra.mrb[6].mxu0 %vm161_vm2, %v637_v38  ;;  %p2455_p13 = por %p2454_p12, %p2453_p11 }
 0x3df   :  { %2245 = vmatprep.mubr.msk.f32.mxu0 %vm2482_vm1, %v2481_v8  ;;  %2244 = vmatpush3.msra.mxu0 %v2671_v1 }
 0x3e0   :  { %2253 = vmatprep.subr.mxu0 %v2481_v8  ;;  %p2456_p0 = pnand %p2455_p13, %p2449_p10 }
 0x4a9   :  { %v632_v50 = vpop.f32.mrb[6].mxu1 }
 0x4aa   :  { %v2232_v51 = vpop.f32.mrb[7].mxu1 }
 0x4ad   :  { %v559_v52 = vpop.f32.mrb[4].mxu0 }
 0x4ae   :  { %v2653_v53 = vadd.f32 %v632_v50, %v559_v52  ;;  %v2227_v54 = vpop.f32.mrb[5].mxu0 }
 0x4b1   :  { %v710_v55 = vpop.f32.mrb[6].mxu0 }
 0x4b2   :  { %v2237_v56 = vpop.f32.mrb[7].mxu0  ;;  %v714_v57 = vsel %vm161_vm2, %v710_v55, -inf }
 0x4b3   :  { %715 = vmax.xlane.f32.xlu1 %v714_v57 }
 0x4c4   :  { %876 = vrot.lane.b32.xlu1 %v2590_v13, %s2492_s15 }
 0x540   :  { %v716_v58 = vpop.xlane.xlu1 %715 }
 0x541   :  { %v717_v59 = vsub.f32 %v710_v55, %v716_v58 }
 0x543   :  { %v718_v60 = vmul.f32 1.442695, %v717_v59 }
 0x544   :  { %v877_v0 = vpop.permute.xlu1 %876 }
 0x545   :  { %2358 = vpow2.f32 %v718_v60 }
 0x54f   :  { %v2359_v61 = vpop.eup %2358 }
 0x550   :  { %2241 = vmatmul.mubr.msk.f32.vlgmr.msra.gmra.mrb[8].mxu1 %vm161_vm2, %v2359_v61  ;;  %v720_v63 = vsel %vm161_vm2, %v2359_v61, 0.0 }
 0x551   :  { %2249 = vmatpush3.xpose.msk.msra.mxu1 %vm161_vm2, %v879_v62  ;;  %721 = vadd.xlane.f32.xlu1 %v720_v63 }
 0x552   :  { %2250 = vmatprep.mubr.msk.f32.mxu1 %vm2482_vm1, %v2481_v8  ;;  %2258 = vmatprep.subr.mxu1 %v2481_v8 }
 0x554   :  { %2251 = vmatmul.mubr.msk.f32.vlgmr.msra.gmra.mrb[10].mxu1 %vm161_vm2, %v877_v0 }
 0x555   :  { %2260 = vmatprep.mubr.msk.f32.mxu1 %vm2482_vm1, %v2481_v8  ;;  %2259 = vmatpush3.msra.mxu1 %v2704_v24 }
 0x556   :  { %2268 = vmatprep.subr.mxu1 %v2481_v8 }
 0x562   :  { %1125 = vrot.lane.b32.xlu1 %v2588_v11, %s2484_s8 }
 0x566   :  { %1291 = vrot.lane.b32.xlu1 %v2588_v11, %s2485_s9 }
 0x5de   :  { %v722_v2 = vpop.xlane.xlu1 %721 }
 0x5df   :  { %2360 = vrcp.f32 %v722_v2 }
 0x5e2   :  { %v1126_v17 = vpop.permute.xlu1 %1125 }
 0x5e9   :  { %v2361_v3 = vpop.eup %2360 }
 0x623   :  { %v796_v4 = vpop.f32.mrb[8].mxu1 }
 0x624   :  { %v800_v5 = vmul.f32 %v2361_v3, %v796_v4  ;;  %v2242_v6 = vpop.f32.mrb[9].mxu1 }
 0x626   :  { %2246 = vmatmul.mubr.msk.f32.vlgmr.msra.gmra.mrb[8].mxu0 %vm161_vm2, %v800_v5 }
 0x627   :  { %v950_v7 = vpop.f32.mrb[10].mxu1  ;;  %2255 = vmatprep.mubr.msk.f32.mxu0 %vm2482_vm1, %v2481_v8 }
 0x628   :  { %v2252_v9 = vpop.f32.mrb[11].mxu1  ;;  %v954_v10 = vsel %vm161_vm2, %v950_v7, -inf }
 0x629   :  { %955 = vmax.xlane.f32.xlu0 %v954_v10 }
 0x63f   :  { %964 = vrot.lane.b32.xlu0 %v2590_v13, %s2493_s16  ;;  %v1292_v13 = vpop.permute.xlu1 %1291 }
 0x643   :  { %1289 = vrot.lane.b32.xlu0 %v2588_v11, %s2483_s7 }
 0x6b6   :  { %v956_v12 = vpop.xlane.xlu0 %955 }
 0x6b7   :  { %v957_v14 = vsub.f32 %v950_v7, %v956_v12 }
 0x6b9   :  { %v958_v15 = vmul.f32 1.442695, %v957_v14 }
 0x6ba   :  { %v965_v16 = vpop.permute.xlu0 %964 }
 0x6bb   :  { %2362 = vpow2.f32 %v958_v15  ;;  %2254 = vmatpush3.msra.mxu0 %v965_v16 }
 0x6bc   :  { %2263 = vmatprep.subr.mxu0 %v2481_v8 }
 0x6be   :  { %v1290_v20 = vpop.permute.xlu0 %1289 }
 0x6c5   :  { %v2363_v18 = vpop.eup %2362 }
 0x6c6   :  { %2256 = vmatmul.mubr.msk.f32.vlgmr.msra.gmra.mrb[10].mxu0 %vm161_vm2, %v2363_v18  ;;  %v960_v19 = vsel %vm161_vm2, %v2363_v18, 0.0 }
 0x6c7   :  { %2264 = vmatpush3.xpose.msk.msra.mxu0 %vm161_vm2, %v1126_v17  ;;  %961 = vadd.xlane.f32.xlu1 %v960_v19 }
 0x6c8   :  { %2265 = vmatprep.mubr.msk.f32.mxu0 %vm2482_vm1, %v2481_v8  ;;  %2273 = vmatprep.subr.mxu0 %v2481_v8 }
 0x6ca   :  { %2266 = vmatmul.mubr.msk.f32.vlgmr.msra.gmra.mrb[12].mxu0 %vm161_vm2, %v2588_v11 }
 0x6cb   :  { %2274 = vmatpush3.xpose.msk.msra.mxu0 %vm161_vm2, %v1292_v13  ;;  %2275 = vmatprep.mubr.msk.f32.mxu0 %vm2482_vm1, %v2481_v8 }
 0x6cc   :  { %2283 = vmatprep.subr.mxu0 %v2481_v8 }
 0x6ce   :  { %2276 = vmatmul.mubr.msk.f32.vlgmr.msra.gmra.mrb[14].mxu0 %vm161_vm2, %v1290_v20 }
 0x6cf   :  { %2284 = vmatpush3.msra.mxu0 %v2633_v35  ;;  %2285 = vmatprep.mubr.msk.f32.mxu0 %vm2482_vm1, %v2481_v8 }
 0x6d0   :  { %2293 = vmatprep.subr.mxu0 %v2481_v8 }
 0x6d8   :  { %1211 = vrot.lane.b32.xlu1 %v2588_v11, %s2487_s10 }
 0x6f9   :  { %v871_v21 = vpop.f32.mrb[8].mxu0 }
 0x6fa   :  { %v875_v22 = vadd.f32 %v871_v21, %v2653_v53  ;;  %v2247_v23 = vpop.f32.mrb[9].mxu0 }
 0x754   :  { %v962_v25 = vpop.xlane.xlu1 %961 }
 0x755   :  { %2364 = vrcp.f32 %v962_v25 }
 0x758   :  { %v1212_v30 = vpop.permute.xlu1 %1211 }
 0x75f   :  { %v2365_v26 = vpop.eup %2364 }
 0x799   :  { %v1036_v27 = vpop.f32.mrb[10].mxu0 }
 0x79a   :  { %v1040_v28 = vmul.f32 %v2365_v26, %v1036_v27  ;;  %v2257_v29 = vpop.f32.mrb[11].mxu0 }
 0x79c   :  { %2261 = vmatmul.mubr.msk.f32.vlgmr.msra.gmra.mrb[12].mxu1 %vm161_vm2, %v1040_v28 }
 0x79d   :  { %2269 = vmatpush3.msra.mxu1 %v1212_v30  ;;  %v1197_v31 = vpop.f32.mrb[12].mxu0  ;;  %2270 = vmatprep.mubr.msk.f32.mxu1 %vm2482_vm1, %v2481_v8 }
 0x79e   :  { %v2267_v32 = vpop.f32.mrb[13].mxu0  ;;  %v1201_v33 = vsel %vm161_vm2, %v1197_v31, -inf  ;;  %2278 = vmatprep.subr.mxu1 %v2481_v8 }
 0x79f   :  { %1202 = vmax.xlane.f32.xlu0 %v1201_v33 }
 0x7a1   :  { %v1363_v34 = vpop.f32.mrb[14].mxu0 }
 0x7a2   :  { %v2277_v35 = vpop.f32.mrb[15].mxu0  ;;  %v1367_v37 = vsel %vm161_vm2, %v1363_v34, -inf }
 0x7a3   :  { %1368 = vmax.xlane.f32.xlu0 %v1367_v37 }
 0x7b9   :  { %1377 = vrot.lane.b32.xlu0 %v2588_v11, %s2486_s3 }
 0x7bd   :  { %1603 = vrot.lane.b32.xlu0 %v2588_v11, %s2488_s11 }
 0x7c1   :  { %1601 = vrot.lane.b32.xlu0 %v2588_v11, %s2489_s12 }
 0x82c   :  { %v1203_v38 = vpop.xlane.xlu0 %1202 }
 0x82d   :  { %v1204_v39 = vsub.f32 %v1197_v31, %v1203_v38 }
 0x82f   :  { %v1205_v40 = vmul.f32 1.442695, %v1204_v39 }
 0x830   :  { %v1369_v41 = vpop.xlane.xlu0 %1368 }
 0x831   :  { %2366 = vpow2.f32 %v1205_v40  ;;  %v1370_v42 = vsub.f32 %v1363_v34, %v1369_v41 }
 0x833   :  { %v1371_v43 = vmul.f32 1.442695, %v1370_v42 }
 0x834   :  { %v1378_v45 = vpop.permute.xlu0 %1377 }
 0x835   :  { %2368 = vpow2.f32 %v1371_v43 }
 0x838   :  { %v1604_v53 = vpop.permute.xlu0 %1603 }
 0x83b   :  { %v2367_v44 = vpop.eup %2366 }
 0x83c   :  { %2271 = vmatmul.mubr.msk.f32.vlgmr.msra.gmra.mrb[14].mxu1 %vm161_vm2, %v2367_v44  ;;  %v1207_v46 = vsel %vm161_vm2, %v2367_v44, 0.0  ;;  %v1602_v54 = vpop.permute.xlu0 %1601 }
 0x83d   :  { %2279 = vmatpush3.msra.mxu1 %v1378_v45  ;;  %1208 = vadd.xlane.f32.xlu0 %v1207_v46 }
 0x83e   :  { %2280 = vmatprep.mubr.msk.f32.mxu1 %vm2482_vm1, %v2481_v8  ;;  %2288 = vmatprep.subr.mxu1 %v2481_v8 }
 0x83f   :  { %v2369_v47 = vpop.eup %2368 }
 0x840   :  { %2281 = vmatmul.mubr.msk.f32.vlgmr.msra.gmra.mrb[16].mxu1 %vm161_vm2, %v2369_v47  ;;  %v1373_v48 = vsel %vm161_vm2, %v2369_v47, 0.0 }
 0x841   :  { %1374 = vadd.xlane.f32.xlu1 %v1373_v48  ;;  %2289 = vmatpush3.msra.mxu1 %v2636_v36 }
 0x842   :  { %2290 = vmatprep.mubr.msk.f32.mxu1 %vm2482_vm1, %v2481_v8  ;;  %2298 = vmatprep.subr.mxu1 %v2481_v8 }
 0x852   :  { %1689 = vrot.lane.b32.xlu1 %v2588_v11, %s2490_s13 }
 0x853   :  { %1843 = vrot.lane.b32.xlu0 %v2588_v11, %s2491_s14 }
 0x86f   :  { %v1111_v50 = vpop.f32.mrb[12].mxu1 }
 0x870   :  { %v1115_v51 = vadd.f32 %v1111_v50, %v875_v22  ;;  %v2262_v52 = vpop.f32.mrb[13].mxu1 }
 0x872   :  { %v1122_v36 = vadd.f32 %v2738_v49, %v1115_v51 }
 0x874   :  { %1123 = vst.msk [vmem:[#allocation8] sm:$0xff] %vm75_vm0, %v1122_v36 }
 0x8ca   :  { %v1209_v55 = vpop.xlane.xlu0 %1208 }
 0x8cb   :  { %2370 = vrcp.f32 %v1209_v55 }
 0x8ce   :  { %v1375_v56 = vpop.xlane.xlu1 %1374  ;;  %v1844_v17 = vpop.permute.xlu0 %1843 }
 0x8cf   :  { %2372 = vrcp.f32 %v1375_v56 }
 0x8d2   :  { %v1690_v61 = vpop.permute.xlu1 %1689 }
 0x8d5   :  { %v2371_v57 = vpop.eup %2370 }
 0x8d9   :  { %v2373_v62 = vpop.eup %2372 }
 0x90f   :  { %v1283_v58 = vpop.f32.mrb[14].mxu1 }
 0x910   :  { %v1287_v59 = vmul.f32 %v2371_v57, %v1283_v58  ;;  %v2272_v60 = vpop.f32.mrb[15].mxu1 }
 0x912   :  { %2291 = vmatmul.mubr.msk.f32.vlgmr.msra.gmra.mrb[18].mxu1 %vm161_vm2, %v1287_v59 }
 0x913   :  { %2299 = vmatpush3.msra.mxu1 %v1690_v61  ;;  %v1449_v63 = vpop.f32.mrb[16].mxu1  ;;  %2300 = vmatprep.mubr.msk.f32.mxu1 %vm2482_vm1, %v2481_v8 }
 0x914   :  { %v1453_v0 = vmul.f32 %v2373_v62, %v1449_v63  ;;  %v2282_v2 = vpop.f32.mrb[17].mxu1  ;;  %2308 = vmatprep.subr.mxu1 %v2481_v8 }
 0x916   :  { %2286 = vmatmul.mubr.msk.f32.vlgmr.msra.gmra.mrb[16].mxu0 %vm161_vm2, %v1453_v0 }
 0x917   :  { %2294 = vmatpush3.xpose.msk.msra.mxu0 %vm161_vm2, %v1604_v53  ;;  %2295 = vmatprep.mubr.msk.f32.mxu0 %vm2482_vm1, %v2481_v8 }
 0x918   :  { %2303 = vmatprep.subr.mxu0 %v2481_v8 }
 0x91a   :  { %2296 = vmatmul.mubr.msk.f32.vlgmr.msra.gmra.mrb[18].mxu0 %vm161_vm2, %v1602_v54 }
 0x91b   :  { %2304 = vmatpush3.msra.mxu0 %v2671_v1  ;;  %2305 = vmatprep.mubr.msk.f32.mxu0 %vm2482_vm1, %v2481_v8 }
 0x91c   :  { %2313 = vmatprep.subr.mxu0 %v2481_v8 }
 0x9e5   :  { %v1597_v3 = vpop.f32.mrb[18].mxu1 }
 0x9e6   :  { %v2292_v4 = vpop.f32.mrb[19].mxu1 }
 0x9e9   :  { %v1524_v5 = vpop.f32.mrb[16].mxu0 }
 0x9ea   :  { %v1598_v6 = vadd.f32 %v1597_v3, %v1524_v5  ;;  %v2287_v7 = vpop.f32.mrb[17].mxu0 }
 0x9ed   :  { %v1675_v9 = vpop.f32.mrb[18].mxu0 }
 0x9ee   :  { %v2297_v10 = vpop.f32.mrb[19].mxu0  ;;  %v1679_v12 = vsel %vm161_vm2, %v1675_v9, -inf }
 0x9ef   :  { %1680 = vmax.xlane.f32.xlu1 %v1679_v12 }
 0xa00   :  { %1841 = vrot.lane.b32.xlu1 %v2588_v11, %s2492_s15 }
 0xa7c   :  { %v1681_v14 = vpop.xlane.xlu1 %1680 }
 0xa7d   :  { %v1682_v1 = vsub.f32 %v1675_v9, %v1681_v14 }
 0xa7f   :  { %v1683_v15 = vmul.f32 1.442695, %v1682_v1 }
 0xa80   :  { %v1842_v19 = vpop.permute.xlu1 %1841 }
 0xa81   :  { %2374 = vpow2.f32 %v1683_v15 }
 0xa8b   :  { %v2375_v16 = vpop.eup %2374 }
 0xa8c   :  { %2301 = vmatmul.mubr.msk.f32.vlgmr.msra.gmra.mrb[20].mxu1 %vm161_vm2, %v2375_v16  ;;  %v1685_v18 = vsel %vm161_vm2, %v2375_v16, 0.0 }
 0xa8d   :  { %2309 = vmatpush3.xpose.msk.msra.mxu1 %vm161_vm2, %v1844_v17  ;;  %1686 = vadd.xlane.f32.xlu1 %v1685_v18 }
 0xa8e   :  { %2310 = vmatprep.mubr.msk.f32.mxu1 %vm2482_vm1, %v2481_v8  ;;  %2318 = vmatprep.subr.mxu1 %v2481_v8 }
 0xa90   :  { %2311 = vmatmul.mubr.msk.f32.vlgmr.msra.gmra.mrb[22].mxu1 %vm161_vm2, %v1842_v19 }
 0xa91   :  { %2319 = vmatpush3.msra.mxu1 %v2704_v24  ;;  %2320 = vmatprep.mubr.msk.f32.mxu1 %vm2482_vm1, %v2481_v8 }
 0xa9e   :  { %1929 = vrot.lane.b32.xlu1 %v2588_v11, %s2493_s16 }
 0xb1a   :  { %v1687_v13 = vpop.xlane.xlu1 %1686 }
 0xb1b   :  { %2376 = vrcp.f32 %v1687_v13 }
 0xb1e   :  { %v1930_v25 = vpop.permute.xlu1 %1929 }
 0xb25   :  { %v2377_v20 = vpop.eup %2376 }
 0xb5f   :  { %v1761_v21 = vpop.f32.mrb[20].mxu1 }
 0xb60   :  { %v1765_v22 = vmul.f32 %v2377_v20, %v1761_v21  ;;  %v2302_v23 = vpop.f32.mrb[21].mxu1 }
 0xb62   :  { %2306 = vmatmul.mubr.msk.f32.vlgmr.msra.gmra.mrb[20].mxu0 %vm161_vm2, %v1765_v22 }
 0xb63   :  { %2314 = vmatpush3.msra.mxu0 %v1930_v25  ;;  %v1915_v26 = vpop.f32.mrb[22].mxu1  ;;  %2315 = vmatprep.mubr.msk.f32.mxu0 %vm2482_vm1, %v2481_v8 }
 0xb64   :  { %v2312_v24 = vpop.f32.mrb[23].mxu1  ;;  %v1919_v27 = vsel %vm161_vm2, %v1915_v26, -inf }
 0xb65   :  { %1920 = vmax.xlane.f32.xlu0 %v1919_v27 }
 0xbf2   :  { %v1921_v28 = vpop.xlane.xlu0 %1920 }
 0xbf3   :  { %v1922_v11 = vsub.f32 %v1915_v26, %v1921_v28 }
 0xbf5   :  { %v1923_v29 = vmul.f32 1.442695, %v1922_v11 }
 0xbf7   :  { %2378 = vpow2.f32 %v1923_v29 }
 0xc01   :  { %v2379_v30 = vpop.eup %2378 }
 0xc02   :  { %2316 = vmatmul.mubr.msk.f32.vlgmr.msra.gmra.mrb[22].mxu0 %vm161_vm2, %v2379_v30  ;;  %v1925_v31 = vsel %vm161_vm2, %v2379_v30, 0.0 }
 0xc03   :  { %1926 = vadd.xlane.f32.xlu0 %v1925_v31 }
 0xc35   :  { %v1836_v32 = vpop.f32.mrb[20].mxu0 }
 0xc36   :  { %v1840_v33 = vadd.f32 %v1836_v32, %v1598_v6  ;;  %v2307_v34 = vpop.f32.mrb[21].mxu0 }
 0xc90   :  { %v1927_v35 = vpop.xlane.xlu0 %1926 }
 0xc91   :  { %2380 = vrcp.f32 %v1927_v35 }
 0xc9b   :  { %v2381_v8 = vpop.eup %2380 }
 0xcd5   :  { %v2001_v37 = vpop.f32.mrb[22].mxu0 }
 0xcd6   :  { %v2005_v38 = vmul.f32 %v2381_v8, %v2001_v37  ;;  %v2317_v39 = vpop.f32.mrb[23].mxu0 }
 0xcd8   :  { %2321 = vmatmul.mubr.msk.f32.vlgmr.msra.gmra.mrb[24].mxu1 %vm161_vm2, %v2005_v38 }
 0xdab   :  { %v2076_v40 = vpop.f32.mrb[24].mxu1 }
 0xdac   :  { %v2080_v41 = vadd.f32 %v2076_v40, %v1840_v33  ;;  %v2322_v42 = vpop.f32.mrb[25].mxu1 }
 0xdae   :  { %v2081_v43 = vadd.f32 %v2738_v49, %v2080_v41 }
 0xdb0   :  { %2083 = vst.msk [vmem:[#allocation8 + $0x8] sm:$0xff] %vm75_vm0, %v2081_v43 }
 0xdb1   :  { %2459 = shalt.err (!%p2456_p0)
}
 0xdb2   :  { %s2460_s23 = scalar_lea.hbm %s2800_s5, 256 }
 0xdb3   :  { %p2461_p1 = scmp.ne.s32.totalorder %s2800_s5, %s2460_s23  ;;  %p2464_p2 = scmp.lt.u32.totalorder %s2460_s23, %s2800_s5 }
 0xdb5   :  { %p2466_p3 = pnand %p2464_p2, %p2461_p1 }
 0xdb7   :  { %2469 = shalt.err (!%p2466_p3)
}
 0xdb8   :  { %2095 = dma.vmem_to_hbm [thread:$0]  %s2090_s18, 256, %s2800_s5, [#allocation4], %s2478_s30, %s2478_s30, %s2479_s6  }
 0xdb9   :  { %2474 = dma.done.wait [#allocation4], 256  }
 0xdba   :  { %2475 = vsyncadd [#allocation4], 4294967040 }
 0xdbb   :  { %2099 = vsyncpa [#allocation3], 1 }
 0xdbc   :  { %2100 = vsyncpa [#allocation6], 1 }
 0xdbd   :  { %2101 = vsyncpa [#allocation4], 1 }

</bundles_post_ra>
